<compile_context>
chip_gen: v5e
topology: v5e:2x2
jax: 0.10.0
libtpu: 0.0.40
codegen_flags: <defaults>
</compile_context>

<pallas_src>
import functools

import jax
import jax.numpy as jnp
from jax.experimental import pallas as pl
from jax.experimental.pallas import tpu as pltpu


def _round_up(x: int, m: int) -> int:
    return ((x + m - 1) // m) * m


def prepare_downstream_params(theta_classification, theta_rank, dtype=None):
    """Parameter-build-time (call ONCE) fusion of the two heads into one weight slab.

    Returns:
      w_fused: (D, Tp + Ip) array; classification head in columns [0, T) of the
               first lane-tile group, rank head in columns [Tp, Tp + I) of the
               second (both 128-aligned so the kernel slices at tile boundaries).
      dims:    (T, I, Tp, Ip) static ints.
    """
    D, T = theta_classification.shape
    D2, I = theta_rank.shape
    assert D == D2, "heads must share the combined_dimensions axis"
    dtype = dtype or theta_classification.dtype

    Tp = _round_up(max(T, 128), 128)
    Ip = _round_up(max(I, 128), 128)

    w_fused = jnp.zeros((D, Tp + Ip), dtype=dtype)
    w_fused = w_fused.at[:, :T].set(theta_classification.astype(dtype))
    w_fused = w_fused.at[:, Tp:Tp + I].set(theta_rank.astype(dtype))
    return w_fused, (T, I, Tp, Ip)


def downstream_kernel(T, I, Tp, Ip, h_ref, w_ref, pred_ref, att_ref):
    """Fused classification + attention heads.

    h_ref   : (B, D)         hidden states
    w_ref   : (D, Tp + Ip)   fused, lane-padded weights
    pred_ref: (B, T)  f32    raw classification logits
    att_ref : (B, I)  f32    softmaxed attention
    """
    # Cast activations to the weight dtype (no-op for f32; pure bf16 MXU pass for
    # bf16 weights) and do ONE matmul for both heads with f32 accumulation.
    h = h_ref[...].astype(w_ref.dtype)
    logits = jnp.dot(h, w_ref[...], preferred_element_type=jnp.float32)  # (B, Tp+Ip)

    # Classification head: raw logits live in columns [0, T).
    pred_ref[...] = logits[:, :T]

    # Attention head: 128-aligned slice of the rank tile, softmax over first I cols.
    rank = logits[:, Tp:Tp + Ip]                                         # (B, Ip)
    col = jax.lax.broadcasted_iota(jnp.int32, rank.shape, 1)
    masked = jnp.where(col < I, rank, -jnp.inf)
    m = jnp.max(masked, axis=-1, keepdims=True)
    e = jnp.exp(masked - m)                      # exp(-inf) = 0 for padding columns
    denom = jnp.sum(e, axis=-1, keepdims=True)
    att = e / denom                              # exact divide (kernel is launch-bound)
    att_ref[...] = att[:, :I]


@functools.partial(jax.jit, static_argnames=("T", "I", "Tp", "Ip"))
def downstream_forward_batched(h2d, w_fused, *, T, I, Tp, Ip):
    """Batched forward: h2d is (B, D). Returns ((B, T) predictions, (B, I) attention)."""
    B, D = h2d.shape
    Np = Tp + Ip
    assert w_fused.shape == (D, Np)

    flops = 2 * B * D * Np
    bytes_accessed = (B * D * h2d.dtype.itemsize
                      + D * Np * w_fused.dtype.itemsize
                      + B * (T + I) * 4)

    predictions, attention = pl.pallas_call(
        functools.partial(downstream_kernel, T, I, Tp, Ip),
        out_shape=(
            jax.ShapeDtypeStruct((B, T), jnp.float32),
            jax.ShapeDtypeStruct((B, I), jnp.float32),
        ),
        in_specs=[
            pl.BlockSpec(memory_space=pltpu.MemorySpace.VMEM),
            pl.BlockSpec(memory_space=pltpu.MemorySpace.VMEM),
        ],
        out_specs=(
            pl.BlockSpec(memory_space=pltpu.MemorySpace.VMEM),
            pl.BlockSpec(memory_space=pltpu.MemorySpace.VMEM),
        ),
        cost_estimate=pl.CostEstimate(
            flops=flops, transcendentals=B * Ip, bytes_accessed=bytes_accessed),
    )(h2d, w_fused)
    return predictions, attention


def downstream_forward(hidden_state, w_fused, dims):
    """Module-faithful forward: hidden_state.view(1, -1) @ heads, softmax on attention."""
    T, I, Tp, Ip = dims
    D = w_fused.shape[0]
    h2d = hidden_state.reshape(1, D)
    return downstream_forward_batched(h2d, w_fused, T=T, I=I, Tp=Tp, Ip=Ip)


def xavier_normal(key, fan_in, fan_out):
    # Matches torch.nn.init.xavier_normal_ (gain=1): std = sqrt(2 / (fan_in + fan_out))
    std = jnp.sqrt(2.0 / (fan_in + fan_out))
    return std * jax.random.normal(key, (fan_in, fan_out), dtype=jnp.float32)


if __name__ == "__main__":
    # Small, module-consistent shapes.
    combined_dimensions = 32   # args.combined_dimensions
    target_number = 4          # number of class labels
    num_identifiers = 8        # len(identifiers)

    key = jax.random.PRNGKey(0)
    k_h, k_wc, k_wr, k_hb = jax.random.split(key, 4)

    # LSTM hidden state (e.g. (1, 1, D)); forward views it as (1, -1).
    hidden_state = jax.random.normal(
        k_h, (1, 1, combined_dimensions), dtype=jnp.float32)
    theta_classification = xavier_normal(k_wc, combined_dimensions, target_number)
    theta_rank = xavier_normal(k_wr, combined_dimensions, num_identifiers)

    # Weight fusion done ONCE at parameter-build time (reused by every forward).
    w_fused, dims = prepare_downstream_params(theta_classification, theta_rank)
    T, I, Tp, Ip = dims

    # ---- 1) Module-faithful single-row forward (f32 weights) ----------------
    predictions, attention = downstream_forward(hidden_state, w_fused, dims)
    jax.block_until_ready((predictions, attention))

    h2d = hidden_state.reshape(1, -1)
    ref_pred = h2d @ theta_classification
    ref_att = jax.nn.softmax(h2d @ theta_rank, axis=1)

    assert predictions.shape == (1, target_number)
    assert attention.shape == (1, num_identifiers)
    assert jnp.allclose(predictions, ref_pred, atol=1e-5, rtol=1e-5)
    assert jnp.allclose(attention, ref_att, atol=1e-5, rtol=1e-5)
    assert jnp.allclose(jnp.sum(attention, axis=1), 1.0, atol=1e-5)

    # ---- 2) Batched path (B=8 hidden states in one launch, unpadded) --------
    B = 8
    h_batch = jax.random.normal(k_hb, (B, combined_dimensions), dtype=jnp.float32)
    pred_b, att_b = downstream_forward_batched(
        h_batch, w_fused, T=T, I=I, Tp=Tp, Ip=Ip)
    jax.block_until_ready((pred_b, att_b))
    ref_pred_b = h_batch @ theta_classification
    ref_att_b = jax.nn.softmax(h_batch @ theta_rank, axis=1)
    assert pred_b.shape == (B, target_number)
    assert att_b.shape == (B, num_identifiers)
    assert jnp.allclose(pred_b, ref_pred_b, atol=1e-5, rtol=1e-5)
    assert jnp.allclose(att_b, ref_att_b, atol=1e-5, rtol=1e-5)

    # ---- 3) bf16-weight path (bf16 x bf16 MXU pass, f32 accumulation) -------
    w_bf16, dims_bf = prepare_downstream_params(
        theta_classification, theta_rank, dtype=jnp.bfloat16)
    pred_bf, att_bf = downstream_forward(hidden_state, w_bf16, dims_bf)
    jax.block_until_ready((pred_bf, att_bf))
    assert jnp.allclose(pred_bf, ref_pred, atol=3e-2, rtol=3e-2)
    assert jnp.allclose(att_bf, ref_att, atol=3e-2, rtol=3e-2)

    print("KERNEL_OK")
</pallas_src>

<mosaic_0001>
module attributes {stable_mosaic.version = 11 : i64} {
  func.func @downstream_kernel(%arg0: memref<1x32xf32, #tpu.memory_space<vmem>>, %arg1: memref<32x256xf32, #tpu.memory_space<vmem>>, %arg2: memref<1x4xf32, #tpu.memory_space<vmem>>, %arg3: memref<1x8xf32, #tpu.memory_space<vmem>>) attributes {dimension_semantics = [], scalar_prefetch = 0 : i64, scratch_operands = 0 : i64, tpu.core_type = #tpu.core_type<tc>} {
    %c0 = arith.constant 0 : index
    %c0_0 = arith.constant 0 : index
    %0 = vector.load %arg0[%c0, %c0_0] : memref<1x32xf32, #tpu.memory_space<vmem>>, vector<1x32xf32>
    %c0_1 = arith.constant 0 : index
    %c0_2 = arith.constant 0 : index
    %1 = vector.load %arg1[%c0_1, %c0_2] : memref<32x256xf32, #tpu.memory_space<vmem>>, vector<32x256xf32>
    %cst = arith.constant dense<0.000000e+00> : vector<1x256xf32>
    %2 = tpu.matmul %0, %1, %cst {dimension_numbers = #tpu.dot_dimension_numbers<[1], [0], [0], [1], [0, 0, 1, 1], [], []>} : vector<1x32xf32>, vector<32x256xf32>, vector<1x256xf32> -> vector<1x256xf32>
    %3 = vector.extract_strided_slice %2 {offsets = [0, 0], sizes = [1, 4], strides = [1, 1]} : vector<1x256xf32> to vector<1x4xf32>
    %c0_3 = arith.constant 0 : index
    %c0_4 = arith.constant 0 : index
    %4 = vector.load %arg2[%c0_3, %c0_4] : memref<1x4xf32, #tpu.memory_space<vmem>>, vector<1x4xf32>
    tpu.vector_store %arg2[%c0_3, %c0_4], %3 {strides = array<i32>} : memref<1x4xf32, #tpu.memory_space<vmem>>, vector<1x4xf32>,
    %5 = vector.extract_strided_slice %2 {offsets = [0, 128], sizes = [1, 128], strides = [1, 1]} : vector<1x256xf32> to vector<1x128xf32>
    %6 = tpu.iota {dimensions = array<i32: 1>} : vector<1x128xi32>
    %c8_i32 = arith.constant 8 : i32
    %7 = vector.broadcast %c8_i32 : i32 to vector<1x128xi32>
    %8 = arith.cmpi slt, %6, %7 : vector<1x128xi32>
    %cst_5 = arith.constant 0xFF800000 : f32
    %9 = vector.broadcast %cst_5 : f32 to vector<1x128xf32>
    %10 = arith.select %8, %5, %9 : vector<1x128xi1>, vector<1x128xf32>
    %cst_6 = arith.constant dense<0xFF800000> : vector<1xf32>
    %11 = vector.multi_reduction <maximumf>, %10, %cst_6 [1] : vector<1x128xf32> to vector<1xf32>
    %12 = vector.shape_cast %11 : vector<1xf32> to vector<1x1xf32>
    %13 = vector.broadcast %12 : vector<1x1xf32> to vector<1x128xf32>
    %14 = arith.subf %10, %13 : vector<1x128xf32>
    %15 = math.exp %14 : vector<1x128xf32>
    %cst_7 = arith.constant dense<0.000000e+00> : vector<1xf32>
    %16 = vector.multi_reduction <add>, %15, %cst_7 [1] : vector<1x128xf32> to vector<1xf32>
    %17 = vector.shape_cast %16 : vector<1xf32> to vector<1x1xf32>
    %18 = vector.broadcast %17 : vector<1x1xf32> to vector<1x128xf32>
    %19 = arith.divf %15, %18 : vector<1x128xf32>
    %20 = vector.extract_strided_slice %19 {offsets = [0, 0], sizes = [1, 8], strides = [1, 1]} : vector<1x128xf32> to vector<1x8xf32>
    %c0_8 = arith.constant 0 : index
    %c0_9 = arith.constant 0 : index
    %21 = vector.load %arg3[%c0_8, %c0_9] : memref<1x8xf32, #tpu.memory_space<vmem>>, vector<1x8xf32>
    tpu.vector_store %arg3[%c0_8, %c0_9], %20 {strides = array<i32>} : memref<1x8xf32, #tpu.memory_space<vmem>>, vector<1x8xf32>,
    return
  }
}

</mosaic_0001>

<bundles_post_ra>
// kernel: downstream_forward_batched.1
= control target key start
LH: loop header
LB: loop body
LE: loop exit
PB: predicated region body
PF: predicated region fallthrough
CT: control target
= control target key end

     0   :  { %9 = vsyncpa [#allocation3], 0  ;;  %s323_s0 = inlined_call_operand.hbm [shape: f32[1,32], index: 0, kind: input, shape index: {}]   ;;  %s324_s1 = inlined_call_operand.hbm [shape: f32[32,256], index: 1, kind: input, shape index: {}]   ;;  %s325_s2 = inlined_call_operand.hbm [shape: f32[1,4], index: 2, kind: output, shape index: {0}]   ;;  %s326_s3 = inlined_call_operand.hbm [shape: f32[1,8], index: 3, kind: output, shape index: {1}]  }
   0x1   :  { %10 = vsyncpa [#allocation6], 0 }
   0x2   :  { %11 = vsyncpa [#allocation4], 0 }
   0x3   :  { %12 = vsyncpa [#allocation9], 0  ;;  %s18_s14 = sshll.u32 %s323_s0, 4  ;;  %s281_s15 = smov [#allocation2]   ;;  %s19_s14 = int_to_ptr.hbm [resolvable:$true] %s18_s14 }
   0x4   :  { %s20_s16 = sshll.u32 %s281_s15, 4  ;;  %s28_s19 = sshll.u32 %s324_s1, 4  ;;  %s21_s16 = int_to_ptr.vmem [resolvable:$true] %s20_s16  ;;  %s29_s19 = int_to_ptr.hbm [resolvable:$true] %s28_s19 }
   0x5   :  { %23 = dma.hbm_to_vmem [thread:$0]  %s19_s14, 16, %s21_s16, [#allocation3]  }
   0x6   :  { %s282_s20 = smov [#allocation5]   ;;  %s283_s22 = smov 256  }
   0x7   :  { %s30_s21 = sshll.u32 %s282_s20, 4  ;;  %s284_s23 = smov 16   ;;  %s31_s21 = int_to_ptr.vmem [resolvable:$true] %s30_s21 }
   0x8   :  { %36 = dma.hbm_to_vmem [thread:$0]  %s29_s19, 1024, %s31_s21, [#allocation6], %s283_s22, %s283_s22, %s284_s23  }
   0x9   :  { %273 = dma.done.wait [#allocation3], 16  }
   0xa   :  { %274 = vsyncadd [#allocation3], 4294967280 }
   0xb   :  { %275 = dma.done.wait [#allocation6], 1024  }
   0xc   :  { %276 = vsyncadd [#allocation6], 4294966272  ;;  %v53_v0 = vld [vmem:[#allocation5 + $0x38] sm:$0xff]  ;;  %v51_v1 = vld [vmem:[#allocation5 + $0x28] sm:$0xff]  ;;  %vm54_vm0 = vcmask 261120   ;;  %v100_v5 = vlaneseq  ;;  %vm104_vm2 = vcmask 1040384  }
   0xd   :  { %90 = vmatpush.msra.mxu1 %v53_v0  ;;  %v49_v2 = vld [vmem:[#allocation5 + $0x18] sm:$0xff]  ;;  %v47_v3 = vld [vmem:[#allocation5 + $0x8] sm:$0xff]  ;;  %v52_v10 = vld [vmem:[#allocation5 + $0x30] sm:$0xff]  ;;  %s285_s0 = smov [#allocation7]   ;;  %s138_s26 = sshll.u32 %s325_s2, 4  ;;  %vm98_vm3 = vcmask 24576   ;;  %s139_s26 = int_to_ptr.hbm [resolvable:$true] %s138_s26 }
   0xe   :  { %v45_v4 = vld [vmem:[#allocation2] sm:$0x1]  ;;  %v101_v6 = vand.u32 127, %v100_v5  ;;  %v50_v11 = vld [vmem:[#allocation5 + $0x20] sm:$0xff]  ;;  %70 = vmatpush.msra.mxu0 %v52_v10  ;;  %v48_v12 = vld [vmem:[#allocation5 + $0x10] sm:$0xff]  ;;  %s136_s1 = sshll.u32 %s285_s0, 4  ;;  %s137_s1 = int_to_ptr.vmem [resolvable:$true] %s136_s1 }
   0xf   :  { %91 = vmatpush.msra.mxu1 %v51_v1  ;;  %v46_v13 = vld [vmem:[#allocation5] sm:$0xff]  ;;  %s286_s2 = smov [#allocation8]   ;;  %s149_s30 = sshll.u32 %s326_s3, 4  ;;  %vm129_vm8 = vcmask 57344   ;;  %s150_s30 = int_to_ptr.hbm [resolvable:$true] %s149_s30 }
  0x10   :  { %vm102_vm1 = vcmp.lt.s32.totalorder %v101_v6, 8  ;;  %71 = vmatpush.msra.mxu0 %v50_v11  ;;  %s147_s27 = sshll.u32 %s286_s2, 4  ;;  %s148_s27 = int_to_ptr.vmem [resolvable:$true] %s147_s27 }
  0x11   :  { %92 = vmatpush.msra.mxu1 %v49_v2 }
  0x12   :  { %72 = vmatpush.msra.mxu0 %v48_v12 }
  0x13   :  { %93 = vmatpush.msra.mxu1 %v47_v3 }
  0x14   :  { %166 = vmatmul.msk.f32.vlgmr.msra.gmra.mxu1 %vm54_vm0, %v45_v4  ;;  %73 = vmatpush.msra.mxu0 %v46_v13 }
  0x15   :  { %165 = vmatmul.msk.f32.vlgmr.msra.gmra.mxu0 %vm54_vm0, %v45_v4 }
  0x91   :  { %v95_v7 = vpop.f32.mrf.mxu1 }
  0x92   :  { %v103_v8 = vsel %vm102_vm1, %v95_v7, -inf  ;;  %v75_v19 = vpop.f32.mrf.mxu0 }
  0x93   :  { %v105_v9 = vsel %vm104_vm2, %v103_v8, -inf  ;;  %99 = vst.msk [vmem:[#allocation7] sm:$0x1] %vm98_vm3, %v75_v19 }
  0x94   :  { %106 = vmax.xlane.f32.xlu0 %v105_v9  ;;  %141 = dma.vmem_to_hbm [thread:$0]  %s137_s1, 16, %s139_s26, [#allocation4]  }
 0x107   :  { %v107_v14 = vpop.xlane.xlu0 %106 }
 0x108   :  { %v108_v15 = vsub.f32 %v103_v8, %v107_v14 }
 0x10a   :  { %v109_v16 = vmul.f32 1.442695, %v108_v15 }
 0x10c   :  { %173 = vpow2.f32 %v109_v16 }
 0x112   :  { %v174_v17 = vpop.eup %173 }
 0x113   :  { %v111_v18 = vsel %vm104_vm2, %v174_v17, 0.0 }
 0x114   :  { %112 = vadd.xlane.f32.xlu0 %v111_v18 }
 0x187   :  { %v113_v20 = vpop.xlane.xlu0 %112 }
 0x188   :  { %175 = vrcp.f32 %v113_v20  ;;  %v125_v24 = vand.u32 2147483648, %v113_v20  ;;  %v123_v26 = vand.u32 2147483647, %v113_v20  ;;  %vm119_vm5 = vweird.f32 %v113_v20 }
 0x18a   :  { %v126_v28 = vor.u32 1.1754944e-38, %v125_v24  ;;  %vm124_vm7 = vcmp.eq.f32.partialorder %v123_v26, 8.507059e+37 }
 0x18e   :  { %v176_v21 = vpop.eup %175 }
 0x18f   :  { %v115_v22 = vmul.f32 %v176_v21, %v113_v20  ;;  %vm120_vm4 = vweird.f32 %v176_v21 }
 0x190   :  { %vm121_vm6 = vmor %vm119_vm5, %vm120_vm4 }
 0x191   :  { %v116_v23 = vsub.f32 1.0, %v115_v22 }
 0x193   :  { %v117_v25 = vmul.f32 %v176_v21, %v116_v23 }
 0x195   :  { %v118_v27 = vadd.f32 %v176_v21, %v117_v25 }
 0x197   :  { %v122_v29 = vsel %vm121_vm6, %v176_v21, %v118_v27 }
 0x198   :  { %v127_v30 = vsel %vm124_vm7, %v126_v28, %v122_v29 }
 0x199   :  { %v128_v31 = vmul.f32 %v174_v17, %v127_v30 }
 0x19b   :  { %130 = vst.msk [vmem:[#allocation8] sm:$0x1] %vm129_vm8, %v128_v31 }
 0x19c   :  { %152 = dma.vmem_to_hbm [thread:$0]  %s148_s27, 16, %s150_s30, [#allocation9]  }
 0x19d   :  { %277 = dma.done.wait [#allocation4], 16  }
 0x19e   :  { %278 = vsyncadd [#allocation4], 4294967280 }
 0x19f   :  { %279 = dma.done.wait [#allocation9], 16  }
 0x1a0   :  { %280 = vsyncadd [#allocation9], 4294967280 }
 0x1a1   :  { %161 = vsyncpa [#allocation3], 1 }
 0x1a2   :  { %162 = vsyncpa [#allocation6], 1 }
 0x1a3   :  { %163 = vsyncpa [#allocation4], 1 }
 0x1a4   :  { %164 = vsyncpa [#allocation9], 1 }

</bundles_post_ra>
